<compile_context>
chip_gen: v5e
topology: v5e:2x2
jax: 0.10.0
libtpu: 0.0.40
codegen_flags: <defaults>
</compile_context>

<pallas_src>
import functools

import jax
import jax.numpy as jnp
from jax.experimental import pallas as pl
from jax.experimental.pallas import tpu as pltpu


def _round_up(x: int, m: int) -> int:
    return ((x + m - 1) // m) * m


# ----------------------------------------------------------------------------
# Kernel body: whole MLP fused, one batch tile per grid step.
# ----------------------------------------------------------------------------
def _mlp_kernel(n_layers, matmul_dtype, *refs):
    """refs = (x_ref, w0, b0, w1, b1, ..., w_head, b_head, out_ref).

    x/out are batch tiles [block_b, d]; weights/biases are full (hidden-dim
    padded) arrays, VMEM-resident across all grid steps (constant index maps).
    """
    x_ref = refs[0]
    out_ref = refs[-1]
    params = refs[1:-1]

    h = x_ref[...]  # already in matmul_dtype (wrapper casts; mirrors x.float())

    # Hidden blocks: Linear -> ReLU (-> Dropout == identity in eval mode).
    for i in range(n_layers - 1):
        w = params[2 * i][...]                      # matmul_dtype
        b = params[2 * i + 1][...]                  # f32
        z = jnp.dot(h, w, preferred_element_type=jnp.float32) + b
        # bias-add / ReLU in f32 on the VPU (safe on v5e); carry the activation
        # in matmul_dtype (bf16 on v6e/v7x) between layers.
        h = jnp.maximum(z, 0.0).astype(matmul_dtype)

    # Head: plain Linear (no activation).
    w = params[-2][...]
    b = params[-1][...]
    out_ref[...] = (jnp.dot(h, w, preferred_element_type=jnp.float32) + b
                    ).astype(out_ref.dtype)


# ----------------------------------------------------------------------------
# One-time parameter preparation (hoisted out of the hot forward path).
# ----------------------------------------------------------------------------
def prepare_mlp_params(weights, biases, matmul_dtype=jnp.bfloat16):
    """Cast + pad parameters once.

    * Only *hidden* feature dims are padded to multiples of 128 (lane-dense
      MXU operands / activations).  d_in and d_out stay unpadded so the
      HBM-side x / out arrays remain compact.
    * Zero padding is mathematically inert: padded weight rows/cols contribute
      0, padded biases are 0, and ReLU(0) = 0.
    * Biases are kept in f32 and reshaped to [1, d].
    """
    assert len(weights) == len(biases) and len(weights) >= 1
    d_in = int(weights[0].shape[0])
    d_out = int(weights[-1].shape[1])
    dims = [d_in] + [int(w.shape[1]) for w in weights]
    dims_p = list(dims)
    for i in range(1, len(dims) - 1):          # pad hidden dims only
        dims_p[i] = _round_up(dims[i], 128)

    params = []
    for li, (w, b) in enumerate(zip(weights, biases)):
        kp, np_ = dims_p[li], dims_p[li + 1]
        w_p = jnp.zeros((kp, np_), matmul_dtype)
        w_p = w_p.at[: w.shape[0], : w.shape[1]].set(w.astype(matmul_dtype))
        b2 = jnp.reshape(b, (1, -1)).astype(jnp.float32)
        b_p = jnp.zeros((1, np_), jnp.float32)
        b_p = b_p.at[:, : b2.shape[1]].set(b2)
        params.append(w_p)
        params.append(b_p)

    return {
        "params": tuple(params),
        "dims": tuple(dims_p),
        "d_in": d_in,
        "d_out": d_out,
        "n_layers": len(weights),
        "matmul_dtype": matmul_dtype,
    }


# ----------------------------------------------------------------------------
# Forward wrapper.
# ----------------------------------------------------------------------------
def mlp_forward(x, prepared, *, block_b=None):
    """Fused, batch-tiled MLP forward.

    Args:
      x:        [B, d_in] array.
      prepared: output of `prepare_mlp_params` (padded/cast params + metadata).
      block_b:  optional batch tile size override (rounded to a multiple of 16).
    Returns:
      [B, d_out] float32 array.
    """
    params = prepared["params"]
    dims_p = prepared["dims"]
    d_in = prepared["d_in"]
    d_out = prepared["d_out"]
    n_layers = prepared["n_layers"]
    matmul_dtype = prepared["matmul_dtype"]

    B, xd = x.shape
    assert xd == d_in, f"expected d_in={d_in}, got {xd}"

    # Single cheap cast in the wrapper (mirrors `x = x.float()`; bf16 halves
    # input-side HBM traffic and is numerically identical to an in-kernel cast).
    x_in = x.astype(matmul_dtype)

    # ---- Batch tiling --------------------------------------------------------
    ALIGN = 16  # safe sublane alignment for both f32 and packed bf16 tiles
    if block_b is None:
        if B > 4096:
            block_b = 2048           # big tiles -> ~86% of HBM roofline
        else:
            # Ensure >= 2 grid steps when B allows, so the "parallel" batch
            # axis can shard across v7x's two TensorCores.
            block_b = max(pl.cdiv(B, 2), ALIGN)
    block_b = max(ALIGN, _round_up(int(block_b), ALIGN))
    block_b = min(block_b, _round_up(B, ALIGN))
    grid = (pl.cdiv(B, block_b),)    # ragged last tile: OOB rows masked on write

    # ---- BlockSpecs: x/out tiled over batch; weights/biases constant blocks --
    # (Constant index maps keep params VMEM-resident; at these sizes the extra
    #  default double-buffer is negligible, so no pipeline_mode override.)
    in_specs = [pl.BlockSpec((block_b, d_in), lambda i: (i, 0))]
    for li in range(n_layers):
        in_specs.append(pl.BlockSpec((dims_p[li], dims_p[li + 1]), lambda i: (0, 0)))
        in_specs.append(pl.BlockSpec((1, dims_p[li + 1]), lambda i: (0, 0)))
    out_specs = pl.BlockSpec((block_b, d_out), lambda i: (i, 0))

    # ---- Headroom-aware VMEM budget + cost estimate ---------------------------
    param_bytes = sum(int(p.size) * p.dtype.itemsize for p in params)
    io_tile_bytes = 2 * block_b * (d_in * x_in.dtype.itemsize + d_out * 4)  # 2x buffered
    act_bytes = 3 * block_b * max(dims_p) * 4                               # live interm.
    footprint = 2 * param_bytes + io_tile_bytes + act_bytes
    vmem_cap = 64 * 1024 * 1024
    try:  # per-generation capacity (e.g. 128 MiB v5e/v6e, 64 MiB v7x)
        vmem_cap = int(getattr(pltpu.get_tpu_info(), "vmem_capacity_bytes", vmem_cap))
    except Exception:
        pass
    vmem_limit = int(min(max(2 * footprint, 16 * 1024 * 1024), 0.75 * vmem_cap))
    vmem_limit = max(vmem_limit, int(1.25 * footprint))  # never clamp below need

    flops = 2 * B * sum(dims_p[i] * dims_p[i + 1] for i in range(n_layers))
    bytes_accessed = (B * d_in * x_in.dtype.itemsize + B * d_out * 4 + param_bytes)

    kernel = functools.partial(_mlp_kernel, n_layers, matmul_dtype)

    out = pl.pallas_call(
        kernel,
        out_shape=jax.ShapeDtypeStruct((B, d_out), jnp.float32),
        grid=grid,
        in_specs=in_specs,
        out_specs=out_specs,
        compiler_params=pltpu.CompilerParams(
            dimension_semantics=("parallel",),
            vmem_limit_bytes=vmem_limit,
        ),
        cost_estimate=pl.CostEstimate(
            flops=int(flops), transcendentals=0, bytes_accessed=int(bytes_accessed)),
    )(x_in, *params)

    return out


# ----------------------------------------------------------------------------
# Reference / init helpers.
# ----------------------------------------------------------------------------
def init_mlp_params(key, d_in, d_layers, d_out):
    """Deterministic init mimicking nn.Linear defaults (U(-1/sqrt(fan_in), +))."""
    dims = [d_in] + list(d_layers) + [d_out]
    weights, biases = [], []
    for i in range(len(dims) - 1):
        fan_in, fan_out = dims[i], dims[i + 1]
        key, kw, kb = jax.random.split(key, 3)
        bound = 1.0 / (fan_in ** 0.5)
        w = jax.random.uniform(kw, (fan_in, fan_out), jnp.float32, -bound, bound)
        b = jax.random.uniform(kb, (1, fan_out), jnp.float32, -bound, bound)
        weights.append(w)
        biases.append(b)
    return weights, biases


def reference_mlp(x, weights, biases):
    h = x.astype(jnp.float32)
    for i in range(len(weights) - 1):
        h = jnp.maximum(h @ weights[i] + biases[i], 0.0)
    return h @ weights[-1] + biases[-1]


if __name__ == "__main__":
    key = jax.random.PRNGKey(0)
    kx, kp, kx2 = jax.random.split(key, 3)

    # Baseline tabular MLP: d_in=16, hidden [32, 32], d_out=4.
    d_in, d_layers, d_out = 16, [32, 32], 4
    weights, biases = init_mlp_params(kp, d_in, d_layers, d_out)

    # Case 1: tiny batch, f32 MXU path (grid = 1).
    params_f32 = prepare_mlp_params(weights, biases, matmul_dtype=jnp.float32)
    x_small = jax.random.normal(kx, (8, d_in), jnp.float32)
    out = jax.block_until_ready(mlp_forward(x_small, params_f32))
    ref = reference_mlp(x_small, weights, biases)
    assert out.shape == (8, d_out)
    assert jnp.allclose(out, ref, atol=1e-2, rtol=1e-2), \
        f"max abs err {jnp.max(jnp.abs(out - ref))}"

    # Case 2: B=300 -> grid=(2,) with a ragged last tile, bf16 MXU fast path.
    params_bf16 = prepare_mlp_params(weights, biases, matmul_dtype=jnp.bfloat16)
    x_big = jax.random.normal(kx2, (300, d_in), jnp.float32)
    out_big = jax.block_until_ready(mlp_forward(x_big, params_bf16))
    ref_big = reference_mlp(x_big, weights, biases)
    assert out_big.shape == (300, d_out)
    assert jnp.allclose(out_big, ref_big, atol=5e-2, rtol=5e-2), \
        f"max abs err {jnp.max(jnp.abs(out_big - ref_big))}"

    print("KERNEL_OK")
</pallas_src>

<mosaic_0001>
module attributes {stable_mosaic.version = 11 : i64} {
  func.func @_mlp_kernel(%arg0: i32, %arg1: memref<16x16xf32, #tpu.memory_space<vmem>>, %arg2: memref<16x128xf32, #tpu.memory_space<vmem>>, %arg3: memref<1x128xf32, #tpu.memory_space<vmem>>, %arg4: memref<128x128xf32, #tpu.memory_space<vmem>>, %arg5: memref<1x128xf32, #tpu.memory_space<vmem>>, %arg6: memref<128x4xf32, #tpu.memory_space<vmem>>, %arg7: memref<1x4xf32, #tpu.memory_space<vmem>>, %arg8: memref<16x4xf32, #tpu.memory_space<vmem>>) attributes {dimension_semantics = [#tpu.dimension_semantics<parallel>], iteration_bounds = array<i64: 1>, scalar_prefetch = 0 : i64, scratch_operands = 0 : i64, tpu.core_type = #tpu.core_type<tc>, window_params = [{transform_indices = @transform_0, window_bounds = array<i64: 16, 16>}, {pipeline_mode = #tpu.pipeline_mode<synchronous>, transform_indices = @transform_1, window_bounds = array<i64: 16, 128>}, {pipeline_mode = #tpu.pipeline_mode<synchronous>, transform_indices = @transform_2, window_bounds = array<i64: 1, 128>}, {pipeline_mode = #tpu.pipeline_mode<synchronous>, transform_indices = @transform_3, window_bounds = array<i64: 128, 128>}, {pipeline_mode = #tpu.pipeline_mode<synchronous>, transform_indices = @transform_4, window_bounds = array<i64: 1, 128>}, {pipeline_mode = #tpu.pipeline_mode<synchronous>, transform_indices = @transform_5, window_bounds = array<i64: 128, 4>}, {pipeline_mode = #tpu.pipeline_mode<synchronous>, transform_indices = @transform_6, window_bounds = array<i64: 1, 4>}, {transform_indices = @transform_7, window_bounds = array<i64: 16, 4>}]} {
    %c0 = arith.constant 0 : index
    %c0_0 = arith.constant 0 : index
    %0 = vector.load %arg1[%c0, %c0_0] : memref<16x16xf32, #tpu.memory_space<vmem>>, vector<16x16xf32>
    %c0_1 = arith.constant 0 : index
    %c0_2 = arith.constant 0 : index
    %1 = vector.load %arg2[%c0_1, %c0_2] : memref<16x128xf32, #tpu.memory_space<vmem>>, vector<16x128xf32>
    %c0_3 = arith.constant 0 : index
    %c0_4 = arith.constant 0 : index
    %2 = vector.load %arg3[%c0_3, %c0_4] : memref<1x128xf32, #tpu.memory_space<vmem>>, vector<1x128xf32>
    %cst = arith.constant dense<0.000000e+00> : vector<16x128xf32>
    %3 = tpu.matmul %0, %1, %cst {dimension_numbers = #tpu.dot_dimension_numbers<[1], [0], [0], [1], [0, 0, 1, 1], [], []>} : vector<16x16xf32>, vector<16x128xf32>, vector<16x128xf32> -> vector<16x128xf32>
    %4 = vector.broadcast %2 : vector<1x128xf32> to vector<16x128xf32>
    %5 = arith.addf %3, %4 : vector<16x128xf32>
    %cst_5 = arith.constant 0.000000e+00 : f32
    %6 = vector.broadcast %cst_5 : f32 to vector<16x128xf32>
    %7 = arith.maximumf %5, %6 : vector<16x128xf32>
    %c0_6 = arith.constant 0 : index
    %c0_7 = arith.constant 0 : index
    %8 = vector.load %arg4[%c0_6, %c0_7] : memref<128x128xf32, #tpu.memory_space<vmem>>, vector<128x128xf32>
    %c0_8 = arith.constant 0 : index
    %c0_9 = arith.constant 0 : index
    %9 = vector.load %arg5[%c0_8, %c0_9] : memref<1x128xf32, #tpu.memory_space<vmem>>, vector<1x128xf32>
    %cst_10 = arith.constant dense<0.000000e+00> : vector<16x128xf32>
    %10 = tpu.matmul %7, %8, %cst_10 {dimension_numbers = #tpu.dot_dimension_numbers<[1], [0], [0], [1], [0, 0, 1, 1], [], []>} : vector<16x128xf32>, vector<128x128xf32>, vector<16x128xf32> -> vector<16x128xf32>
    %11 = vector.broadcast %9 : vector<1x128xf32> to vector<16x128xf32>
    %12 = arith.addf %10, %11 : vector<16x128xf32>
    %cst_11 = arith.constant 0.000000e+00 : f32
    %13 = vector.broadcast %cst_11 : f32 to vector<16x128xf32>
    %14 = arith.maximumf %12, %13 : vector<16x128xf32>
    %c0_12 = arith.constant 0 : index
    %c0_13 = arith.constant 0 : index
    %15 = vector.load %arg6[%c0_12, %c0_13] : memref<128x4xf32, #tpu.memory_space<vmem>>, vector<128x4xf32>
    %c0_14 = arith.constant 0 : index
    %c0_15 = arith.constant 0 : index
    %16 = vector.load %arg7[%c0_14, %c0_15] : memref<1x4xf32, #tpu.memory_space<vmem>>, vector<1x4xf32>
    %cst_16 = arith.constant dense<0.000000e+00> : vector<16x4xf32>
    %17 = tpu.matmul %14, %15, %cst_16 {dimension_numbers = #tpu.dot_dimension_numbers<[1], [0], [0], [1], [0, 0, 1, 1], [], []>} : vector<16x128xf32>, vector<128x4xf32>, vector<16x4xf32> -> vector<16x4xf32>
    %18 = vector.broadcast %16 : vector<1x4xf32> to vector<16x4xf32>
    %19 = arith.addf %17, %18 : vector<16x4xf32>
    %c0_17 = arith.constant 0 : index
    %c0_18 = arith.constant 0 : index
    %20 = vector.load %arg8[%c0_17, %c0_18] : memref<16x4xf32, #tpu.memory_space<vmem>>, vector<16x4xf32>
    tpu.vector_store %arg8[%c0_17, %c0_18], %19 {strides = array<i32>} : memref<16x4xf32, #tpu.memory_space<vmem>>, vector<16x4xf32>,
    return
  }
  func.func @transform_0(%arg0: i32) -> (i32, i32) {
    %c0_i32 = arith.constant 0 : i32
    %c0_i32_0 = arith.constant 0 : i32
    return %arg0, %c0_i32 : i32, i32
  }
  func.func @transform_1(%arg0: i32) -> (i32, i32) {
    %c0_i32 = arith.constant 0 : i32
    %c0_i32_0 = arith.constant 0 : i32
    %c0_i32_1 = arith.constant 0 : i32
    return %c0_i32, %c0_i32_0 : i32, i32
  }
  func.func @transform_2(%arg0: i32) -> (i32, i32) {
    %c0_i32 = arith.constant 0 : i32
    %c0_i32_0 = arith.constant 0 : i32
    %c0_i32_1 = arith.constant 0 : i32
    return %c0_i32, %c0_i32_0 : i32, i32
  }
  func.func @transform_3(%arg0: i32) -> (i32, i32) {
    %c0_i32 = arith.constant 0 : i32
    %c0_i32_0 = arith.constant 0 : i32
    %c0_i32_1 = arith.constant 0 : i32
    return %c0_i32, %c0_i32_0 : i32, i32
  }
  func.func @transform_4(%arg0: i32) -> (i32, i32) {
    %c0_i32 = arith.constant 0 : i32
    %c0_i32_0 = arith.constant 0 : i32
    %c0_i32_1 = arith.constant 0 : i32
    return %c0_i32, %c0_i32_0 : i32, i32
  }
  func.func @transform_5(%arg0: i32) -> (i32, i32) {
    %c0_i32 = arith.constant 0 : i32
    %c0_i32_0 = arith.constant 0 : i32
    %c0_i32_1 = arith.constant 0 : i32
    return %c0_i32, %c0_i32_0 : i32, i32
  }
  func.func @transform_6(%arg0: i32) -> (i32, i32) {
    %c0_i32 = arith.constant 0 : i32
    %c0_i32_0 = arith.constant 0 : i32
    %c0_i32_1 = arith.constant 0 : i32
    return %c0_i32, %c0_i32_0 : i32, i32
  }
  func.func @transform_7(%arg0: i32) -> (i32, i32) {
    %c0_i32 = arith.constant 0 : i32
    %c0_i32_0 = arith.constant 0 : i32
    return %arg0, %c0_i32 : i32, i32
  }
}

</mosaic_0001>

<bundles_post_ra>
// kernel: tpu_custom_call.1
= control target key start
LH: loop header
LB: loop body
LE: loop exit
PB: predicated region body
PF: predicated region fallthrough
CT: control target
= control target key end

     0   :  { %12 = vsyncpa [#allocation3], 0  ;;  %s485_s0 = inlined_call_operand.hbm [shape: f32[8,16], index: 0, kind: input, shape index: {}]   ;;  %s486_s1 = inlined_call_operand.hbm [shape: f32[16,128], index: 1, kind: input, shape index: {}]   ;;  %s487_s2 = inlined_call_operand.vmem [shape: f32[1,128], index: 2, kind: input, shape index: {}]   ;;  %s488_s3 = inlined_call_operand.vmem [shape: f32[128,128], index: 3, kind: input, shape index: {}]   ;;  %s489_s4 = inlined_call_operand.vmem [shape: f32[1,128], index: 4, kind: input, shape index: {}]   ;;  %s490_s5 = inlined_call_operand.vmem [shape: f32[128,4], index: 5, kind: input, shape index: {}]   ;;  %s491_s6 = inlined_call_operand.vmem [shape: f32[1,4], index: 6, kind: input, shape index: {}]   ;;  %s492_s7 = inlined_call_operand.vmem [shape: f32[8,4], index: 7, kind: output, shape index: {}]  }
   0x1   :  { %13 = vsyncpa [#allocation5], 0 }
   0x2   :  { %17 = vsyncadd [#allocation3], 128  ;;  %s18_s26 = sshll.u32 %s485_s0, 4  ;;  %s325_s27 = smov [#allocation2]   ;;  %s19_s26 = int_to_ptr.hbm [resolvable:$true] %s18_s26 }
   0x3   :  { %s20_s28 = sshll.u32 %s325_s27, 4  ;;  %s31_s8 = sshll.u32 %s486_s1, 4  ;;  %s21_s28 = int_to_ptr.vmem [resolvable:$true] %s20_s28  ;;  %s32_s8 = int_to_ptr.hbm [resolvable:$true] %s31_s8 }
   0x4   :  { %s326_s9 = smov 128   ;;  %s327_s10 = smov 8  }
   0x5   :  { %26 = dma.hbm_to_vmem [thread:$0]  %s19_s26, 128, %s21_s28, [#allocation3], %s326_s9, %s326_s9, %s327_s10  }
   0x6   :  { %s328_s11 = smov [#allocation4]  }
   0x7   :  { %s33_s12 = sshll.u32 %s328_s11, 4  ;;  %s34_s12 = int_to_ptr.vmem [resolvable:$true] %s33_s12 }
   0x8   :  { %39 = dma.hbm_to_vmem [thread:$0]  %s32_s8, 256, %s34_s12, [#allocation5], %s326_s9, %s326_s9, %s327_s10  }
   0x9   :  { %321 = dma.done.wait [#allocation3], 256  }
   0xa   :  { %322 = vsyncadd [#allocation3], 4294967040 }
   0xb   :  { %323 = dma.done.wait [#allocation5], 256  }
   0xc   :  { %324 = vsyncadd [#allocation5], 4294967040  ;;  %v61_v0 = vld [vmem:[#allocation4 + $0x8] sm:$0xff]  ;;  %v60_v1 = vld [vmem:[#allocation4] sm:$0xff]  ;;  %vm66_vm0 = vcmask 130048   ;;  %vm186_vm1 = vcmask 31744  }
   0xd   :  { %87 = vmatpush.msra.mxu0 %v61_v0  ;;  %v58_v2 = vld [vmem:[#allocation2] sm:$0xff]  ;;  %v113_v3 = vld [vmem:[%s488_s3 + $0x78] sm:$0xff]  ;;  %v112_v4 = vld [vmem:[%s488_s3 + $0x70] sm:$0xff] }
   0xe   :  { %118 = vmatpush.msra.mxu1 %v113_v3  ;;  %234 = vmatpush.msra.mxu3 %v113_v3  ;;  %v111_v5 = vld [vmem:[%s488_s3 + $0x68] sm:$0xff]  ;;  %v110_v6 = vld [vmem:[%s488_s3 + $0x60] sm:$0xff]  ;;  %v109_v7 = vld [vmem:[%s488_s3 + $0x58] sm:$0xff] }
   0xf   :  { %88 = vmatpush.msra.mxu0 %v60_v1  ;;  %v59_v8 = vld [vmem:[#allocation2 + $0x8] sm:$0xff]  ;;  %v108_v9 = vld [vmem:[%s488_s3 + $0x50] sm:$0xff]  ;;  %v106_v11 = vld [vmem:[%s488_s3 + $0x40] sm:$0xff] }
  0x10   :  { %232 = vmatmul.msk.f32.vlgmr.msra.gmra.mxu0 %vm66_vm0, %v58_v2  ;;  %119 = vmatpush.msra.mxu1 %v112_v4  ;;  %v107_v10 = vld [vmem:[%s488_s3 + $0x48] sm:$0xff]  ;;  %v105_v12 = vld [vmem:[%s488_s3 + $0x38] sm:$0xff]  ;;  %v104_v13 = vld [vmem:[%s488_s3 + $0x30] sm:$0xff] }
  0x11   :  { %235 = vmatpush.msra.mxu3 %v112_v4  ;;  %v103_v14 = vld [vmem:[%s488_s3 + $0x28] sm:$0xff]  ;;  %v102_v15 = vld [vmem:[%s488_s3 + $0x20] sm:$0xff]  ;;  %v101_v16 = vld [vmem:[%s488_s3 + $0x18] sm:$0xff] }
  0x12   :  { %120 = vmatpush.msra.mxu1 %v111_v5  ;;  %v100_v17 = vld [vmem:[%s488_s3 + $0x10] sm:$0xff]  ;;  %v99_v18 = vld [vmem:[%s488_s3 + $0x8] sm:$0xff]  ;;  %v98_v19 = vld [vmem:[%s488_s3] sm:$0xff] }
  0x13   :  { %236 = vmatpush.msra.mxu3 %v111_v5  ;;  %v158_v20 = vld [vmem:[%s490_s5 + $0x78] sm:$0xff]  ;;  %v157_v21 = vld [vmem:[%s490_s5 + $0x70] sm:$0xff]  ;;  %v156_v22 = vld [vmem:[%s490_s5 + $0x68] sm:$0xff] }
  0x14   :  { %121 = vmatpush.msra.mxu1 %v110_v6  ;;  %163 = vmatpush.msrb.mxu0 %v158_v20  ;;  %v155_v23 = vld [vmem:[%s490_s5 + $0x60] sm:$0xff]  ;;  %v154_v24 = vld [vmem:[%s490_s5 + $0x58] sm:$0xff]  ;;  %v153_v25 = vld [vmem:[%s490_s5 + $0x50] sm:$0xff] }
  0x15   :  { %237 = vmatpush.msra.mxu3 %v110_v6  ;;  %250 = vmatpush.msra.mxu2 %v158_v20  ;;  %v152_v26 = vld [vmem:[%s490_s5 + $0x48] sm:$0xff]  ;;  %v151_v27 = vld [vmem:[%s490_s5 + $0x40] sm:$0xff]  ;;  %v150_v28 = vld [vmem:[%s490_s5 + $0x38] sm:$0xff] }
  0x16   :  { %122 = vmatpush.msra.mxu1 %v109_v7  ;;  %164 = vmatpush.msrb.mxu0 %v157_v21  ;;  %v270_v29 = vld [vmem:[%s487_s2] ss:$0 sm:$0xff]  ;;  %v149_v30 = vld [vmem:[%s490_s5 + $0x30] sm:$0xff]  ;;  %v148_v31 = vld [vmem:[%s490_s5 + $0x28] sm:$0xff] }
  0x17   :  { %238 = vmatpush.msra.mxu3 %v109_v7  ;;  %251 = vmatpush.msra.mxu2 %v157_v21  ;;  %v147_v34 = vld [vmem:[%s490_s5 + $0x20] sm:$0xff]  ;;  %v146_v36 = vld [vmem:[%s490_s5 + $0x18] sm:$0xff]  ;;  %v145_v40 = vld [vmem:[%s490_s5 + $0x10] sm:$0xff] }
  0x18   :  { %233 = vmatmul.msk.f32.gmra.mxu0 %vm66_vm0, %v59_v8  ;;  %123 = vmatpush.msra.mxu1 %v108_v9  ;;  %v144_v41 = vld [vmem:[%s490_s5 + $0x8] sm:$0xff]  ;;  %v143_v42 = vld [vmem:[%s490_s5] sm:$0xff] }
  0x19   :  { %239 = vmatpush.msra.mxu3 %v108_v9  ;;  %165 = vmatpush.msrb.mxu0 %v156_v22  ;;  %v271_v43 = vld [vmem:[%s489_s4] ss:$0 sm:$0xff] }
  0x1a   :  { %124 = vmatpush.msra.mxu1 %v107_v10  ;;  %252 = vmatpush.msra.mxu2 %v156_v22  ;;  %v272_v50 = vld [vmem:[%s491_s6] ss:$0 sm:$0xff] }
  0x1b   :  { %240 = vmatpush.msra.mxu3 %v107_v10  ;;  %166 = vmatpush.msrb.mxu0 %v155_v23 }
  0x1c   :  { %125 = vmatpush.msra.mxu1 %v106_v11  ;;  %253 = vmatpush.msra.mxu2 %v155_v23 }
  0x1d   :  { %241 = vmatpush.msra.mxu3 %v106_v11  ;;  %167 = vmatpush.msrb.mxu0 %v154_v24 }
  0x1e   :  { %126 = vmatpush.msra.mxu1 %v105_v12  ;;  %254 = vmatpush.msra.mxu2 %v154_v24 }
  0x1f   :  { %242 = vmatpush.msra.mxu3 %v105_v12  ;;  %168 = vmatpush.msrb.mxu0 %v153_v25 }
  0x20   :  { %127 = vmatpush.msra.mxu1 %v104_v13  ;;  %255 = vmatpush.msra.mxu2 %v153_v25 }
  0x21   :  { %243 = vmatpush.msra.mxu3 %v104_v13  ;;  %169 = vmatpush.msrb.mxu0 %v152_v26 }
  0x22   :  { %128 = vmatpush.msra.mxu1 %v103_v14  ;;  %256 = vmatpush.msra.mxu2 %v152_v26 }
  0x23   :  { %244 = vmatpush.msra.mxu3 %v103_v14  ;;  %170 = vmatpush.msrb.mxu0 %v151_v27 }
  0x24   :  { %129 = vmatpush.msra.mxu1 %v102_v15  ;;  %257 = vmatpush.msra.mxu2 %v151_v27 }
  0x25   :  { %245 = vmatpush.msra.mxu3 %v102_v15  ;;  %171 = vmatpush.msrb.mxu0 %v150_v28 }
  0x26   :  { %130 = vmatpush.msra.mxu1 %v101_v16  ;;  %258 = vmatpush.msra.mxu2 %v150_v28 }
  0x27   :  { %246 = vmatpush.msra.mxu3 %v101_v16  ;;  %172 = vmatpush.msrb.mxu0 %v149_v30 }
  0x28   :  { %131 = vmatpush.msra.mxu1 %v100_v17  ;;  %259 = vmatpush.msra.mxu2 %v149_v30 }
  0x29   :  { %247 = vmatpush.msra.mxu3 %v100_v17  ;;  %173 = vmatpush.msrb.mxu0 %v148_v31 }
  0x2a   :  { %132 = vmatpush.msra.mxu1 %v99_v18  ;;  %260 = vmatpush.msra.mxu2 %v148_v31 }
  0x2b   :  { %248 = vmatpush.msra.mxu3 %v99_v18  ;;  %174 = vmatpush.msrb.mxu0 %v147_v34 }
  0x2c   :  { %133 = vmatpush.msra.mxu1 %v98_v19  ;;  %261 = vmatpush.msra.mxu2 %v147_v34 }
  0x2d   :  { %249 = vmatpush.msra.mxu3 %v98_v19  ;;  %175 = vmatpush.msrb.mxu0 %v146_v36 }
  0x2e   :  { %262 = vmatpush.msra.mxu2 %v146_v36 }
  0x2f   :  { %176 = vmatpush.msrb.mxu0 %v145_v40 }
  0x30   :  { %263 = vmatpush.msra.mxu2 %v145_v40 }
  0x31   :  { %177 = vmatpush.msrb.mxu0 %v144_v41 }
  0x32   :  { %264 = vmatpush.msra.mxu2 %v144_v41 }
  0x33   :  { %178 = vmatpush.msrb.mxu0 %v143_v42 }
  0x34   :  { %265 = vmatpush.msra.mxu2 %v143_v42 }
  0x8d   :  { %v90_v32 = vpop.f32.mrf.mxu0 }
  0x8e   :  { %v91_v33 = vadd.f32 %v270_v29, %v90_v32 }
  0x90   :  { %v96_v35 = vmax.f32 %v91_v33, 0.0 }
  0x92   :  { %134 = vmatmul.f32.vlgmr.msra.gmra.mxu1 %v96_v35 }
  0x95   :  { %v93_v37 = vpop.f32.mrf.mxu0 }
  0x96   :  { %v94_v38 = vadd.f32 %v270_v29, %v93_v37 }
  0x98   :  { %v97_v39 = vmax.f32 %v94_v38, 0.0 }
  0x9a   :  { %137 = vmatmul.f32.vlgmr.msra.gmra.mxu3 %v97_v39 }
 0x10f   :  { %v135_v44 = vpop.f32.mrf.mxu1 }
 0x110   :  { %v136_v45 = vadd.f32 %v271_v43, %v135_v44 }
 0x112   :  { %v141_v46 = vmax.f32 %v136_v45, 0.0 }
 0x114   :  { %179 = vmatmul.f32.vlgmr.msrb.gmra.mxu0 %v141_v46 }
 0x11d   :  { %v138_v47 = vpop.f32.mrf.mxu3 }
 0x11e   :  { %v139_v48 = vadd.f32 %v271_v43, %v138_v47 }
 0x120   :  { %v142_v49 = vmax.f32 %v139_v48, 0.0 }
 0x122   :  { %182 = vmatmul.f32.vlgmr.msra.gmra.mxu2 %v142_v49 }
 0x191   :  { %v180_v51 = vpop.f32.mrf.mxu0 }
 0x192   :  { %v181_v52 = vadd.f32 %v272_v50, %v180_v51 }
 0x194   :  { %187 = vst.msk [vmem:[#allocation6] sm:$0xff] %vm186_vm1, %v181_v52 }
 0x19b   :  { %v219_v53 = vld [vmem:[#allocation6] sm:$0xff] }
 0x19c   :  { %220 = vst [vmem:[%s492_s7] sm:$0xff] %v219_v53 }
 0x1a5   :  { %v183_v54 = vpop.f32.mrf.mxu2 }
 0x1a6   :  { %226 = vsyncpa [#allocation3], 1 }
 0x1a7   :  { %227 = vsyncpa [#allocation5], 1 }

</bundles_post_ra>
